<compile_context>
chip_gen: v5e
topology: v5e:2x2
jax: 0.10.0
libtpu: 0.0.40
codegen_flags: <defaults>
</compile_context>

<pallas_src>
import jax
import jax.numpy as jnp
from jax.experimental import pallas as pl
from jax.experimental.pallas import tpu as pltpu


def _user_encoder_kernel(x_ref, mask_ref, w1_ref, b1_ref, w2_ref, b2_ref, o_ref):
    Bt, S, E = x_ref.shape
    H = w1_ref.shape[1]

    x = x_ref[...]                                   # (Bt, S, E), caller dtype
    x2 = x.reshape(Bt * S, E)                        # fold batch into M; free when S % 8 == 0

    # fc1 + tanh: ONE large MXU matmul over all rows in the tile, f32 accumulation.
    h1 = jnp.tanh(
        jnp.dot(x2, w1_ref[...], preferred_element_type=jnp.float32)
        + b1_ref[...]
    )                                                # (Bt*S, H) f32

    # fc2 has output width 1 -> VPU multiply + lane reduce instead of an N=1 matmul.
    h1_3d = h1.reshape(Bt, S, H)                     # split leading dim; minor dim unchanged
    w2_row = w2_ref[...].reshape(1, 1, H)            # (1, 1, H) f32
    scores = jnp.sum(h1_3d * w2_row, axis=-1) + b2_ref[...]     # (Bt, S) f32, S on lanes

    # masked_fill(mask == 0, -1e9); mask is a tiny lane-dense f32 tile.
    a = jnp.where(mask_ref[...] != 0.0, scores, jnp.float32(-1e9))

    # Softmax over the sequence (lane) axis, f32 math; denom via EUP approx reciprocal.
    a_max = jnp.max(a, axis=-1, keepdims=True)       # (Bt, 1)
    p = jnp.exp(a - a_max)                           # (Bt, S)
    denom = jnp.sum(p, axis=-1, keepdims=True)       # (Bt, 1)
    alpha = p * pl.reciprocal(denom, approx=True)    # (Bt, S)

    # r[b] = sum_s alpha[b, s] * x[b, s, :]   (broadcast-multiply + sublane reduce)
    r = jnp.sum(alpha.reshape(Bt, S, 1) * x.astype(jnp.float32), axis=1)   # (Bt, E) f32
    o_ref[...] = r.astype(o_ref.dtype)


def user_encoder(h, mask, w1, b1, w2, b2, *, block_batch=32):
    """h: (B, S, E); mask: (B, S) with 0 = masked (or None). Weights pre-transposed
    to (in, out): w1 (E, H), b1 (H,), w2 (H, 1), b2 (1,). Returns u: (B, E) in h.dtype.
    """
    B, S, E = h.shape
    H = w1.shape[1]

    if mask is None:
        mask = jnp.ones((B, S), dtype=jnp.float32)
    mask = mask.astype(jnp.float32)

    # Batch-tile size: Bt must be a multiple of 8 (sublane rule for the (Bt, E) and
    # (Bt, S) blocks) unless it covers the whole (possibly padded) batch. Pick Bt so
    # Bt*S is a multiple of the MXU row dim (256 on v6e/v7x, 128 on v5e) and the
    # double-buffered h tile fits the per-generation VMEM budget (64 MiB on v7x).
    Bt = B if B <= block_batch else block_batch
    n_blk = -(-B // Bt)
    Bp = n_blk * Bt
    if Bp != B:
        h = jnp.pad(h, ((0, Bp - B), (0, 0), (0, 0)))
        # Padded rows are fully masked -> uniform softmax (no NaN) and sliced off below.
        mask = jnp.pad(mask, ((0, Bp - B), (0, 0)))

    # h streams in its caller dtype (no wrapper-side cast = no extra HBM pass over the
    # dominant tensor). W1 follows h's dtype so the fc1 matmul runs in one MXU mode;
    # biases and the fc2 row stay f32 (all elementwise / softmax math is f32 in-kernel).
    w1_k = w1.astype(h.dtype)
    b1_2d = b1.reshape(1, H).astype(jnp.float32)
    w2_row = w2.reshape(1, H).astype(jnp.float32)    # (H, 1) column -> (1, H) row
    b2_2d = b2.reshape(1, 1).astype(jnp.float32)

    out = pl.pallas_call(
        _user_encoder_kernel,
        out_shape=jax.ShapeDtypeStruct((Bp, E), h.dtype),
        grid_spec=pltpu.PrefetchScalarGridSpec(
            num_scalar_prefetch=0,
            grid=(n_blk,),
            in_specs=[
                pl.BlockSpec((Bt, S, E), lambda b: (b, 0, 0)),   # h
                pl.BlockSpec((Bt, S), lambda b: (b, 0)),         # mask (f32), S on lanes
                pl.BlockSpec((E, H), lambda b: (0, 0)),          # W1 (in x out); constant block -> fetched once
                pl.BlockSpec((1, H), lambda b: (0, 0)),          # b1 (f32)
                pl.BlockSpec((1, H), lambda b: (0, 0)),          # w2 row (f32)
                pl.BlockSpec((1, 1), lambda b: (0, 0)),          # b2 (f32)
            ],
            out_specs=pl.BlockSpec((Bt, E), lambda b: (b, 0)),   # lane-dense (Bt, E)
        ),
        compiler_params=pltpu.CompilerParams(
            dimension_semantics=("parallel",),       # lets v7x shard the batch grid over its 2 TCs
        ),
    )(h, mask, w1_k, b1_2d, w2_row, b2_2d)

    return out[:B]


def _reference(h, mask, w1, b1, w2, b2):
    """Pure-JAX f32 reference mirroring the PyTorch module."""
    a = jnp.tanh(h @ w1 + b1) @ w2 + b2              # (B, S, 1)
    a = jnp.where(mask[..., None] == 0, -1e9, a)
    alpha = jax.nn.softmax(a, axis=1)                # (B, S, 1)
    return jnp.einsum("bsi,bse->be", alpha, h)       # (B, E)


if __name__ == "__main__":
    # Small shapes consistent with UserEncoder(emb_dim, query_dim).
    B, S, E, H = 2, 8, 32, 16   # batch, history length, emb_dim, query_dim

    key = jax.random.PRNGKey(0)
    kh, kw1, kb1, kw2, kb2 = jax.random.split(key, 5)

    h = jax.random.normal(kh, (B, S, E), dtype=jnp.float32)
    # mask: first batch element uses all S items, second only the first 5.
    lengths = jnp.array([S, 5], dtype=jnp.int32)
    mask = (jnp.arange(S)[None, :] < lengths[:, None]).astype(jnp.float32)  # (B, S)

    # nn.Linear parameters, pre-transposed to (in, out).
    w1 = 0.1 * jax.random.normal(kw1, (E, H), dtype=jnp.float32)
    b1 = 0.1 * jax.random.normal(kb1, (H,), dtype=jnp.float32)
    w2 = 0.1 * jax.random.normal(kw2, (H, 1), dtype=jnp.float32)
    b2 = 0.1 * jax.random.normal(kb2, (1,), dtype=jnp.float32)

    u = jax.block_until_ready(user_encoder(h, mask, w1, b1, w2, b2))

    u_ref = _reference(h, mask, w1, b1, w2, b2)
    assert u.shape == (B, E)
    max_err = jnp.max(jnp.abs(u - u_ref))
    # f32 matmul + approx reciprocal in the softmax denom => slightly relaxed tolerance.
    assert jnp.allclose(u, u_ref, atol=5e-3, rtol=5e-3), f"max abs err {max_err}"

    print("KERNEL_OK")
</pallas_src>

<mosaic_0001>
module attributes {stable_mosaic.version = 11 : i64} {
  func.func @_user_encoder_kernel(%arg0: i32, %arg1: memref<2x8x32xf32, #tpu.memory_space<vmem>>, %arg2: memref<2x8xf32, #tpu.memory_space<vmem>>, %arg3: memref<32x16xf32, #tpu.memory_space<vmem>>, %arg4: memref<1x16xf32, #tpu.memory_space<vmem>>, %arg5: memref<1x16xf32, #tpu.memory_space<vmem>>, %arg6: memref<1x1xf32, #tpu.memory_space<vmem>>, %arg7: memref<2x32xf32, #tpu.memory_space<vmem>>) attributes {dimension_semantics = [#tpu.dimension_semantics<parallel>], iteration_bounds = array<i64: 1>, scalar_prefetch = 0 : i64, scratch_operands = 0 : i64, tpu.core_type = #tpu.core_type<tc>, window_params = [{transform_indices = @transform_0, window_bounds = array<i64: 2, 8, 32>}, {transform_indices = @transform_1, window_bounds = array<i64: 2, 8>}, {pipeline_mode = #tpu.pipeline_mode<synchronous>, transform_indices = @transform_2, window_bounds = array<i64: 32, 16>}, {pipeline_mode = #tpu.pipeline_mode<synchronous>, transform_indices = @transform_3, window_bounds = array<i64: 1, 16>}, {pipeline_mode = #tpu.pipeline_mode<synchronous>, transform_indices = @transform_4, window_bounds = array<i64: 1, 16>}, {pipeline_mode = #tpu.pipeline_mode<synchronous>, transform_indices = @transform_5, window_bounds = array<i64: 1, 1>}, {transform_indices = @transform_6, window_bounds = array<i64: 2, 32>}]} {
    %c0 = arith.constant 0 : index
    %c0_0 = arith.constant 0 : index
    %c0_1 = arith.constant 0 : index
    %0 = vector.load %arg1[%c0, %c0_0, %c0_1] : memref<2x8x32xf32, #tpu.memory_space<vmem>>, vector<2x8x32xf32>
    %1 = vector.shape_cast %0 : vector<2x8x32xf32> to vector<16x32xf32>
    %c0_2 = arith.constant 0 : index
    %c0_3 = arith.constant 0 : index
    %2 = vector.load %arg3[%c0_2, %c0_3] : memref<32x16xf32, #tpu.memory_space<vmem>>, vector<32x16xf32>
    %cst = arith.constant dense<0.000000e+00> : vector<16x16xf32>
    %3 = tpu.matmul %1, %2, %cst {dimension_numbers = #tpu.dot_dimension_numbers<[1], [0], [0], [1], [0, 0, 1, 1], [], []>} : vector<16x32xf32>, vector<32x16xf32>, vector<16x16xf32> -> vector<16x16xf32>
    %c0_4 = arith.constant 0 : index
    %c0_5 = arith.constant 0 : index
    %4 = vector.load %arg4[%c0_4, %c0_5] : memref<1x16xf32, #tpu.memory_space<vmem>>, vector<1x16xf32>
    %5 = vector.broadcast %4 : vector<1x16xf32> to vector<16x16xf32>
    %6 = arith.addf %3, %5 : vector<16x16xf32>
    %7 = math.tanh %6 : vector<16x16xf32>
    %8 = vector.shape_cast %7 : vector<16x16xf32> to vector<2x8x16xf32>
    %c0_6 = arith.constant 0 : index
    %c0_7 = arith.constant 0 : index
    %9 = vector.load %arg5[%c0_6, %c0_7] : memref<1x16xf32, #tpu.memory_space<vmem>>, vector<1x16xf32>
    %10 = vector.shape_cast %9 : vector<1x16xf32> to vector<1x1x16xf32>
    %11 = vector.broadcast %10 : vector<1x1x16xf32> to vector<2x8x16xf32>
    %12 = arith.mulf %8, %11 : vector<2x8x16xf32>
    %cst_8 = arith.constant dense<0.000000e+00> : vector<2x8xf32>
    %13 = vector.multi_reduction <add>, %12, %cst_8 [2] : vector<2x8x16xf32> to vector<2x8xf32>
    %c0_9 = arith.constant 0 : index
    %c0_10 = arith.constant 0 : index
    %14 = vector.load %arg6[%c0_9, %c0_10] : memref<1x1xf32, #tpu.memory_space<vmem>>, vector<1x1xf32>
    %15 = vector.broadcast %14 : vector<1x1xf32> to vector<2x8xf32>
    %16 = arith.addf %13, %15 : vector<2x8xf32>
    %c0_11 = arith.constant 0 : index
    %c0_12 = arith.constant 0 : index
    %17 = vector.load %arg2[%c0_11, %c0_12] : memref<2x8xf32, #tpu.memory_space<vmem>>, vector<2x8xf32>
    %cst_13 = arith.constant 0.000000e+00 : f32
    %18 = vector.broadcast %cst_13 : f32 to vector<2x8xf32>
    %19 = arith.cmpf one, %17, %18 : vector<2x8xf32>
    %cst_14 = arith.constant -1.000000e+09 : f32
    %20 = vector.broadcast %cst_14 : f32 to vector<2x8xf32>
    %21 = arith.select %19, %16, %20 : vector<2x8xi1>, vector<2x8xf32>
    %cst_15 = arith.constant dense<0xFF800000> : vector<2xf32>
    %22 = vector.multi_reduction <maximumf>, %21, %cst_15 [1] : vector<2x8xf32> to vector<2xf32>
    %23 = vector.shape_cast %22 : vector<2xf32> to vector<2x1xf32>
    %24 = vector.broadcast %23 : vector<2x1xf32> to vector<2x8xf32>
    %25 = arith.subf %21, %24 : vector<2x8xf32>
    %26 = math.exp %25 : vector<2x8xf32>
    %cst_16 = arith.constant dense<0.000000e+00> : vector<2xf32>
    %27 = vector.multi_reduction <add>, %26, %cst_16 [1] : vector<2x8xf32> to vector<2xf32>
    %28 = vector.shape_cast %27 : vector<2xf32> to vector<2x1xf32>
    %29 = tpu.reciprocal %28 {approx = true} : vector<2x1xf32> -> vector<2x1xf32>
    %30 = vector.broadcast %29 : vector<2x1xf32> to vector<2x8xf32>
    %31 = arith.mulf %26, %30 : vector<2x8xf32>
    %32 = vector.shape_cast %31 : vector<2x8xf32> to vector<2x8x1xf32>
    %33 = vector.broadcast %32 : vector<2x8x1xf32> to vector<2x8x32xf32>
    %34 = arith.mulf %33, %0 : vector<2x8x32xf32>
    %cst_17 = arith.constant dense<0.000000e+00> : vector<2x32xf32>
    %35 = vector.multi_reduction <add>, %34, %cst_17 [1] : vector<2x8x32xf32> to vector<2x32xf32>
    %c0_18 = arith.constant 0 : index
    %c0_19 = arith.constant 0 : index
    %36 = vector.load %arg7[%c0_18, %c0_19] : memref<2x32xf32, #tpu.memory_space<vmem>>, vector<2x32xf32>
    tpu.vector_store %arg7[%c0_18, %c0_19], %35 {strides = array<i32>} : memref<2x32xf32, #tpu.memory_space<vmem>>, vector<2x32xf32>,
    return
  }
  func.func @transform_0(%arg0: i32) -> (i32, i32, i32) {
    %c0_i32 = arith.constant 0 : i32
    %c0_i32_0 = arith.constant 0 : i32
    %c0_i32_1 = arith.constant 0 : i32
    return %arg0, %c0_i32, %c0_i32_0 : i32, i32, i32
  }
  func.func @transform_1(%arg0: i32) -> (i32, i32) {
    %c0_i32 = arith.constant 0 : i32
    %c0_i32_0 = arith.constant 0 : i32
    return %arg0, %c0_i32 : i32, i32
  }
  func.func @transform_2(%arg0: i32) -> (i32, i32) {
    %c0_i32 = arith.constant 0 : i32
    %c0_i32_0 = arith.constant 0 : i32
    %c0_i32_1 = arith.constant 0 : i32
    return %c0_i32, %c0_i32_0 : i32, i32
  }
  func.func @transform_3(%arg0: i32) -> (i32, i32) {
    %c0_i32 = arith.constant 0 : i32
    %c0_i32_0 = arith.constant 0 : i32
    %c0_i32_1 = arith.constant 0 : i32
    return %c0_i32, %c0_i32_0 : i32, i32
  }
  func.func @transform_4(%arg0: i32) -> (i32, i32) {
    %c0_i32 = arith.constant 0 : i32
    %c0_i32_0 = arith.constant 0 : i32
    %c0_i32_1 = arith.constant 0 : i32
    return %c0_i32, %c0_i32_0 : i32, i32
  }
  func.func @transform_5(%arg0: i32) -> (i32, i32) {
    %c0_i32 = arith.constant 0 : i32
    %c0_i32_0 = arith.constant 0 : i32
    %c0_i32_1 = arith.constant 0 : i32
    return %c0_i32, %c0_i32_0 : i32, i32
  }
  func.func @transform_6(%arg0: i32) -> (i32, i32) {
    %c0_i32 = arith.constant 0 : i32
    %c0_i32_0 = arith.constant 0 : i32
    return %arg0, %c0_i32 : i32, i32
  }
}

</mosaic_0001>

<bundles_post_ra>
// kernel: tpu_custom_call.1
= control target key start
LH: loop header
LB: loop body
LE: loop exit
PB: predicated region body
PF: predicated region fallthrough
CT: control target
= control target key end

     0   :  { %s298_s0 = inlined_call_operand.vmem [shape: f32[2,8,32], index: 0, kind: input, shape index: {}]   ;;  %s299_s1 = inlined_call_operand.vmem [shape: f32[2,8], index: 1, kind: input, shape index: {}]   ;;  %s300_s2 = inlined_call_operand.vmem [shape: f32[32,16], index: 2, kind: input, shape index: {}]   ;;  %s301_s3 = inlined_call_operand.vmem [shape: f32[1,16], index: 3, kind: input, shape index: {}]   ;;  %s302_s4 = inlined_call_operand.vmem [shape: f32[1,16], index: 4, kind: input, shape index: {}]   ;;  %s303_s5 = inlined_call_operand.<no memory space> [shape: f32[1,1], index: 5, kind: input, shape index: {}]   ;;  %s304_s6 = inlined_call_operand.hbm [shape: f32[2,32], index: 6, kind: output, shape index: {}]  }
   0x1   :  { %v11_v0 = vstv %s303_s5 }
   0x2   :  { %12 = vst [vmem:[#allocation2] sm:$0x1] %v11_v0 }
   0x3   :  { %v31_v1 = vld [vmem:[%s300_s2 + $0x18] sm:$0xff]  ;;  %v30_v2 = vld [vmem:[%s300_s2 + $0x10] sm:$0xff]  ;;  %v29_v3 = vld [vmem:[%s300_s2 + $0x8] sm:$0xff] }
   0x4   :  { %55 = vmatpush.msra.mxu0 %v31_v1  ;;  %168 = vmatpush.msra.mxu1 %v31_v1 }
   0x6   :  { %56 = vmatpush.msra.mxu0 %v30_v2  ;;  %169 = vmatpush.msra.mxu1 %v30_v2 }
   0x7   :  { %13 = vsyncpa [#allocation4], 0  ;;  %v28_v4 = vld [vmem:[%s300_s2] sm:$0xff]  ;;  %vm36_vm0 = vcmask 261120   ;;  %v274_v6 = vld [vmem:[%s298_s0 + $0x8] sm:$0xff]  ;;  %v214_v7 = vmov 0   ;;  %v94_v22 = vlaneseq }
   0x8   :  { %57 = vmatpush.msra.mxu0 %v29_v3  ;;  %v269_v5 = vld [vmem:[%s298_s0] sm:$0xff]  ;;  %170 = vmatpush.msra.mxu1 %v29_v3  ;;  %vm74_vm1 = vcmask 130048   ;;  %vm98_vm2 = vcmask 1041409   ;;  %vm102_vm4 = vcmask 58368   ;;  %s157_s15 = sshll.u32 %s304_s6, 4  ;;  %vm148_vm5 = vcmask 254976   ;;  %s158_s15 = int_to_ptr.hbm [resolvable:$true] %s157_s15 }
   0x9   :  { %174 = vset.pattern.permute.xlu1 %v214_v7  ;;  %v179_v8 = vld [vmem:[#allocation2] ss:$0 sm:$0xff]  ;;  %v95_v24 = vand.u32 127, %v94_v22  ;;  %v116_v39 = vshrl.u32 %v94_v22, 7 }
   0xa   :  { %58 = vmatpush.msra.mxu0 %v28_v4  ;;  %171 = vmatpush.msra.mxu1 %v28_v4  ;;  %v177_v9 = vld [vmem:[%s301_s3] ss:$0 sm:$0xff] }
   0xb   :  { %166 = vmatmul.msk.f32.vlgmr.msra.gmra.mxu0 %vm36_vm0, %v269_v5  ;;  %167 = vmatmul.msk.f32.vlgmr.msra.gmra.mxu1 %vm36_vm0, %v274_v6  ;;  %v178_v14 = vld [vmem:[%s302_s4] ss:$0 sm:$0xff] }
   0xc   :  { %85 = vperm.xlu1 %174, %v179_v8   ;;  %v90_v27 = vld [vmem:[%s299_s1] sm:$0x3]  ;;  %176 = vset.pattern.permute.xlu0 %v116_v39  ;;  %s215_s1 = smov [#allocation3]  }
   0xd   :  { %vm91_vm3 = vcmp.ne.f32.partialorder %v90_v27, 0.0  ;;  %175 = vset.pattern.permute.xlu2 %v116_v39  ;;  %s155_s4 = sshll.u32 %s215_s1, 4  ;;  %s156_s4 = int_to_ptr.vmem [resolvable:$true] %s155_s4 }
  0x7e   :  { %v86_v23 = vpop.permute.xlu1 %85 }
  0x88   :  { %v60_v10 = vpop.f32.mrf.mxu0  ;;  %v63_v11 = vpop.f32.mrf.mxu1 }
  0x89   :  { %v61_v12 = vadd.f32 %v177_v9, %v60_v10  ;;  %v64_v13 = vadd.f32 %v177_v9, %v63_v11 }
  0x8b   :  { %180 = vtanh.f32 %v61_v12 }
  0x8c   :  { %182 = vtanh.f32 %v64_v13 }
  0x91   :  { %v181_v15 = vpop.eup %180 }
  0x92   :  { %v72_v16 = vmul.f32 %v181_v15, %v178_v14  ;;  %v183_v17 = vpop.eup %182 }
  0x93   :  { %v73_v19 = vmul.f32 %v183_v17, %v178_v14 }
  0x94   :  { %v75_v18 = vsel %vm74_vm1, %v72_v16, 0.0 }
  0x95   :  { %76 = vadd.xlane.f32.xlu0 %v75_v18  ;;  %v78_v20 = vsel %vm74_vm1, %v73_v19, 0.0 }
  0x9d   :  { %79 = vadd.xlane.f32.xlu0 %v78_v20 }
 0x108   :  { %v77_v21 = vpop.xlane.xlu0 %76 }
 0x109   :  { %v88_v25 = vadd.f32 %v86_v23, %v77_v21 }
 0x10b   :  { %v96_v29 = vperm.slane %v88_v25, %v95_v24 }
 0x110   :  { %v80_v26 = vpop.xlane.xlu0 %79 }
 0x111   :  { %v89_v28 = vadd.f32 %v86_v23, %v80_v26 }
 0x113   :  { %v97_v30 = vperm.slane %v89_v28, %v95_v24 }
 0x115   :  { %v99_v31 = vsel %vm98_vm2, %v97_v30, %v96_v29 }
 0x116   :  { %v101_v32 = vsel %vm91_vm3, %v99_v31, -1e+09 }
 0x117   :  { %v103_v33 = vsel %vm102_vm4, %v101_v32, -inf }
 0x118   :  { %104 = vmax.xlane.f32.xlu1 %v103_v33 }
 0x18b   :  { %v105_v34 = vpop.xlane.xlu1 %104 }
 0x18c   :  { %v106_v35 = vsub.f32 %v101_v32, %v105_v34 }
 0x18e   :  { %v107_v36 = vmul.f32 1.442695, %v106_v35 }
 0x190   :  { %184 = vpow2.f32 %v107_v36 }
 0x196   :  { %v185_v37 = vpop.eup %184 }
 0x197   :  { %v109_v38 = vsel %vm102_vm4, %v185_v37, 0.0 }
 0x198   :  { %110 = vadd.xlane.f32.xlu2 %v109_v38 }
 0x20b   :  { %v111_v40 = vpop.xlane.xlu2 %110 }
 0x20c   :  { %186 = vrcp.f32 %v111_v40 }
 0x212   :  { %v187_v41 = vpop.eup %186 }
 0x213   :  { %v113_v42 = vmul.f32 %v187_v41, %v185_v37 }
 0x215   :  { %v121_v43 = vperm.slane %v113_v42, 1  ;;  %v114_v44 = vperm.slane %v113_v42, 0 }
 0x217   :  { %126 = vperm.xlu0 %176, %v121_v43   ;;  %119 = vperm.xlu2 %175, %v114_v44  }
 0x271   :  { %v120_v45 = vpop.permute.xlu2 %119 }
 0x272   :  { %v128_v46 = vmul.f32 %v120_v45, %v269_v5 }
 0x274   :  { %v130_v47 = vsel %vm36_vm0, %v128_v46, 0.0 }
 0x275   :  { %v131_v48 = vrot.slane %v130_v47, 4 }
 0x277   :  { %v132_v49 = vadd.f32 %v131_v48, %v130_v47 }
 0x279   :  { %v133_v52 = vrot.slane %v132_v49, 2 }
 0x27b   :  { %v134_v55 = vadd.f32 %v133_v52, %v132_v49 }
 0x27d   :  { %v135_v58 = vrot.slane %v134_v55, 1 }
 0x27f   :  { %v136_v61 = vadd.f32 %v135_v58, %v134_v55 }
 0x289   :  { %v127_v50 = vpop.permute.xlu0 %126 }
 0x28a   :  { %v129_v51 = vmul.f32 %v127_v50, %v274_v6 }
 0x28c   :  { %v137_v53 = vsel %vm36_vm0, %v129_v51, 0.0 }
 0x28d   :  { %v138_v54 = vrot.slane %v137_v53, 4 }
 0x28f   :  { %v139_v56 = vadd.f32 %v138_v54, %v137_v53 }
 0x291   :  { %v140_v57 = vrot.slane %v139_v56, 2 }
 0x293   :  { %v141_v59 = vadd.f32 %v140_v57, %v139_v56 }
 0x295   :  { %v142_v60 = vrot.slane %v141_v59, 1 }
 0x297   :  { %v143_v62 = vadd.f32 %v142_v60, %v141_v59 }
 0x299   :  { %v146_v63 = vsel %vm98_vm2, %v143_v62, %v136_v61 }
 0x29a   :  { %149 = vst.msk [vmem:[#allocation3] sm:$0x3] %vm148_vm5, %v146_v63 }
 0x29b   :  { %160 = dma.vmem_to_hbm [thread:$0]  %s156_s4, 32, %s158_s15, [#allocation4]  }
 0x29c   :  { %212 = dma.done.wait [#allocation4], 32  }
 0x29d   :  { %213 = vsyncadd [#allocation4], 4294967264 }
 0x29e   :  { %165 = vsyncpa [#allocation4], 1 }

</bundles_post_ra>
